<compile_context>
chip_gen: v6e
topology: v6e:2x2x1
jax: 0.10.0
libtpu: 0.0.40
codegen_flags: <defaults>
</compile_context>

<pallas_src>
import functools

import jax
import jax.numpy as jnp
from jax.experimental import pallas as pl
from jax.experimental.pallas import tpu as pltpu

_LANE = 128
_SUBLANE = 8


def _round_up(n, m):
    return ((n + m - 1) // m) * m


def _vmem_config():
    """Per-generation scoped-VMEM limit and planning budget (bytes)."""
    try:
        cap = getattr(pltpu.get_tpu_info(), "vmem_capacity_bytes", None)
    except Exception:  # API drift / non-TPU trace: fall back to safest size
        cap = None
    if not cap:
        cap = 64 * 1024 * 1024                      # v7x per-TC; safe everywhere
    limit = min((3 * cap) // 4, 96 * 1024 * 1024)   # what we let Mosaic use
    budget = min(cap // 2, 64 * 1024 * 1024)        # what the tiler plans against
    return int(limit), int(budget)


def _fused_kernel(x_ref, w1t_ref, b1_ref, w2_ref, b2_ref, wc_ref, bc_ref,
                  o_ref, *, inv_s):
    """Single pass for one batch slab: mean -> cSE FC -> sSE conv -> fused max."""
    x = x_ref[0]                                                     # (C, S)
    if x.dtype != jnp.float32:
        x = x.astype(jnp.float32)
    # cSE: channel means, then the tiny FC stack as broadcast-mul + XLU reduce
    # (no MXU GEMV needed for a (C x C//r) stack on a single batch element).
    mean_col = jnp.sum(x, axis=1, keepdims=True) * inv_s             # (C, 1)
    h_row = jnp.maximum(
        jnp.sum(w1t_ref[...] * mean_col, axis=0, keepdims=True) + b1_ref[...],
        0.0)                                                         # (1, Cr)
    gate_col = jax.nn.sigmoid(
        jnp.sum(w2_ref[...] * h_row, axis=1, keepdims=True) + b2_ref[...])  # (C,1)
    # sSE 1x1x1 conv: VPU multiply + cross-sublane (XLU) reduce.
    mask = jax.nn.sigmoid(
        jnp.sum(x * wc_ref[...], axis=0, keepdims=True) + bc_ref[0])  # (1, S)
    o_ref[0] = jnp.maximum(x * gate_col, x * mask).astype(o_ref.dtype)


def _apply_kernel(x_ref, gate_ref, wc_ref, bc_ref, o_ref):
    """Tiled pass 2: out = max(x * cse_gate, x * sigmoid(wc . x + bc))."""
    x = x_ref[0]                                                     # (C, S_TILE)
    if x.dtype != jnp.float32:
        x = x.astype(jnp.float32)
    gate = gate_ref[0]                                               # (C, 1)
    # Column-local math: garbage lanes of a ragged last tile stay in their
    # own columns and their stores are clipped, so no masking is needed.
    mask = jax.nn.sigmoid(
        jnp.sum(x * wc_ref[...], axis=0, keepdims=True) + bc_ref[0])  # (1, S_TILE)
    o_ref[0] = jnp.maximum(x * gate, x * mask).astype(o_ref.dtype)


def _spatial_tile(S, C, itemsize, budget_bytes, s_tile_max):
    """Lane-dense spatial tile width for the tiled gating pass (requires S >= 128)."""
    c_pad = _round_up(max(C, 1), _SUBLANE)
    # Per lane-column bytes: x + out double-buffered (input dtype) plus ~3 f32
    # temporaries of the (C, S_TILE) block and the (1, S_TILE) mask row.
    per_col = c_pad * (4 * itemsize + 3 * 4) + 4
    tile = budget_bytes // per_col
    tile = min(tile, (4 * 1024 * 1024) // (c_pad * itemsize))   # ~4 MiB x block
    tile = min(tile, s_tile_max, (S // _LANE) * _LANE)          # never exceed S
    tile = max(_LANE, (tile // _LANE) * _LANE)
    return tile, pl.cdiv(S, tile)


def squeeze_and_excitation(x, params, *, s_tile_max=1 << 17, force_two_pass=False):
    """x: (B, C, D, H, W).  params: (w1, b1, w2, b2, wc, bc)."""
    B, C, D, H, W = x.shape
    S = D * H * W
    w1, b1, w2, b2, wc, bc = params
    cr = w1.shape[0]
    itemsize = jnp.dtype(x.dtype).itemsize

    vmem_limit, vmem_budget = _vmem_config()

    xf = x.reshape(B, C, S)
    wc_col = wc.reshape(C, 1).astype(jnp.float32)
    bc_s = bc.reshape(1).astype(jnp.float32)

    # f32, sublane/lane-padded footprint of one (C, S) slab; ~6x covers the
    # double-buffered x/out blocks plus in-kernel temporaries.
    slab = _round_up(max(C, 1), _SUBLANE) * _round_up(S, _LANE) * 4
    single_pass = (not force_two_pass) and (6 * slab <= vmem_budget or S <= _LANE)

    if single_pass:
        # ---- Fast path: one fused kernel; x read once, out written once. ----
        w1t = w1.T.astype(jnp.float32)                    # (C, Cr)
        b1_row = b1.reshape(1, cr).astype(jnp.float32)    # (1, Cr)
        w2m = w2.astype(jnp.float32)                      # (C, Cr)
        b2_col = b2.reshape(C, 1).astype(jnp.float32)     # (C, 1)
        out = pl.pallas_call(
            functools.partial(_fused_kernel, inv_s=1.0 / S),
            out_shape=jax.ShapeDtypeStruct((B, C, S), x.dtype),
            grid=(B,),
            in_specs=[
                pl.BlockSpec((1, C, S), lambda b: (b, 0, 0)),       # x slab
                pl.BlockSpec((C, cr), lambda b: (0, 0)),            # w1^T
                pl.BlockSpec((1, cr), lambda b: (0, 0)),            # b1
                pl.BlockSpec((C, cr), lambda b: (0, 0)),            # w2
                pl.BlockSpec((C, 1), lambda b: (0, 0)),             # b2
                pl.BlockSpec((C, 1), lambda b: (0, 0)),             # sSE conv w
                pl.BlockSpec(memory_space=pltpu.MemorySpace.SMEM),  # sSE conv b
            ],
            out_specs=pl.BlockSpec((1, C, S), lambda b: (b, 0, 0)),
            compiler_params=pltpu.CompilerParams(
                dimension_semantics=("parallel",),
                vmem_limit_bytes=vmem_limit),
        )(xf, w1t, b1_row, w2m, b2_col, wc_col, bc_s)
        return out.reshape(B, C, D, H, W)

    # ---- Tiled fallback (slab does not fit in VMEM) --------------------------
    # Channel sums on the unpadded array in XLA (f32 accumulation, no masking
    # needed; XLA spreads the reduction over both v7x TensorCores even at B=1),
    # then the tiny FC stack once per batch in XLA.
    means = jnp.sum(xf, axis=2, dtype=jnp.float32) / jnp.float32(S)   # (B, C)
    h = jnp.maximum(means @ w1.T.astype(jnp.float32) + b1.astype(jnp.float32), 0.0)
    gate = jax.nn.sigmoid(h @ w2.T.astype(jnp.float32) + b2.astype(jnp.float32))
    gate = gate[:, :, None]                                           # (B, C, 1)

    s_tile, n_s = _spatial_tile(S, C, itemsize, vmem_budget, s_tile_max)

    out = pl.pallas_call(
        _apply_kernel,
        out_shape=jax.ShapeDtypeStruct((B, C, S), x.dtype),
        grid=(B, n_s),
        in_specs=[
            pl.BlockSpec((1, C, s_tile), lambda b, s: (b, 0, s)),   # x tile
            pl.BlockSpec((1, C, 1), lambda b, s: (b, 0, 0)),        # cSE gate
            pl.BlockSpec((C, 1), lambda b, s: (0, 0)),              # sSE conv w
            pl.BlockSpec(memory_space=pltpu.MemorySpace.SMEM),      # sSE conv b
        ],
        out_specs=pl.BlockSpec((1, C, s_tile), lambda b, s: (b, 0, s)),
        compiler_params=pltpu.CompilerParams(
            dimension_semantics=("parallel", "parallel"),
            vmem_limit_bytes=vmem_limit),
    )(xf, gate, wc_col, bc_s)

    return out.reshape(B, C, D, H, W)


def init_params(key, num_channels, reduction_ratio=2):
    """Deterministic PyTorch-style uniform init for the Linear/Conv3d params."""
    c = num_channels
    cr = max(1, c // reduction_ratio)
    k1, k2, k3, k4, k5, k6 = jax.random.split(key, 6)

    def u(k, shape, fan_in):
        bound = 1.0 / jnp.sqrt(jnp.float32(fan_in))
        return jax.random.uniform(k, shape, jnp.float32, -bound, bound)

    w1 = u(k1, (cr, c), c)     # Linear(c -> c//r) weight
    b1 = u(k2, (cr,), c)       # Linear(c -> c//r) bias
    w2 = u(k3, (c, cr), cr)    # Linear(c//r -> c) weight
    b2 = u(k4, (c,), cr)       # Linear(c//r -> c) bias
    wc = u(k5, (c,), c)        # Conv3d(c, 1, kernel_size=1) weight flattened
    bc = u(k6, (), c)          # Conv3d bias
    return (w1, b1, w2, b2, wc, bc)


def reference(x, params):
    """Pure-JAX reference reproducing the PyTorch forward."""
    w1, b1, w2, b2, wc, bc = params
    mean = x.mean(axis=(2, 3, 4))                                   # (B, C)
    h = jnp.maximum(mean @ w1.T + b1, 0.0)                          # (B, Cr)
    gate = jax.nn.sigmoid(h @ w2.T + b2)                            # (B, C)
    cse = x * gate[:, :, None, None, None]
    s = jnp.einsum("bcdhw,c->bdhw", x, wc) + bc                     # (B, D, H, W)
    sse = x * jax.nn.sigmoid(s)[:, None]
    return jnp.maximum(cse, sse)


if __name__ == "__main__":
    key = jax.random.PRNGKey(0)

    configs = [
        # (B, C, D, H, W, r, force_two_pass, s_tile_max)
        (2, 4, 4, 4, 8, 2, False, 1 << 17),  # S=128: fast path, exact lane fit
        (2, 4, 3, 5, 7, 2, False, 1 << 17),  # S=105: fast path, ragged lanes
        (2, 8, 4, 5, 16, 2, True, 128),      # S=320: tiled path, ragged last tile
        (1, 8, 4, 8, 8, 2, True, 128),       # S=256, B=1: tiled path, exact tiles
    ]
    for i, (B, C, D, H, W, r, two_pass, stm) in enumerate(configs):
        kx, kp, key = jax.random.split(key, 3)
        x = jax.random.normal(kx, (B, C, D, H, W), jnp.float32)
        params = init_params(kp, num_channels=C, reduction_ratio=r)

        out = squeeze_and_excitation(x, params, s_tile_max=stm,
                                     force_two_pass=two_pass)
        out = jax.block_until_ready(out)
        ref = reference(x, params)

        assert out.shape == x.shape, f"bad shape (config {i})"
        assert jnp.allclose(out, ref, atol=1e-5, rtol=1e-5), f"mismatch (config {i})"

    print("KERNEL_OK")
</pallas_src>

<mosaic_0001>
module attributes {stable_mosaic.version = 11 : i64} {
  func.func @_fused_kernel(%arg0: i32, %arg1: memref<1x4x128xf32, #tpu.memory_space<vmem>>, %arg2: memref<4x2xf32, #tpu.memory_space<vmem>>, %arg3: memref<1x2xf32, #tpu.memory_space<vmem>>, %arg4: memref<4x2xf32, #tpu.memory_space<vmem>>, %arg5: memref<4x1xf32, #tpu.memory_space<vmem>>, %arg6: memref<4x1xf32, #tpu.memory_space<vmem>>, %arg7: memref<1xf32, #tpu.memory_space<smem>>, %arg8: memref<1x4x128xf32, #tpu.memory_space<vmem>>) attributes {dimension_semantics = [#tpu.dimension_semantics<parallel>], iteration_bounds = array<i64: 2>, scalar_prefetch = 0 : i64, scratch_operands = 0 : i64, tpu.core_type = #tpu.core_type<tc>, window_params = [{transform_indices = @transform_0, window_bounds = array<i64: 1, 4, 128>}, {pipeline_mode = #tpu.pipeline_mode<synchronous>, transform_indices = @transform_1, window_bounds = array<i64: 4, 2>}, {pipeline_mode = #tpu.pipeline_mode<synchronous>, transform_indices = @transform_2, window_bounds = array<i64: 1, 2>}, {pipeline_mode = #tpu.pipeline_mode<synchronous>, transform_indices = @transform_3, window_bounds = array<i64: 4, 2>}, {pipeline_mode = #tpu.pipeline_mode<synchronous>, transform_indices = @transform_4, window_bounds = array<i64: 4, 1>}, {pipeline_mode = #tpu.pipeline_mode<synchronous>, transform_indices = @transform_5, window_bounds = array<i64: 4, 1>}, {transform_indices = @transform_6, window_bounds = array<i64: 1>}, {transform_indices = @transform_7, window_bounds = array<i64: 1, 4, 128>}]} {
    %c0 = arith.constant 0 : index
    %c0_0 = arith.constant 0 : index
    %c0_1 = arith.constant 0 : index
    %0 = vector.load %arg1[%c0, %c0_0, %c0_1] : memref<1x4x128xf32, #tpu.memory_space<vmem>>, vector<1x4x128xf32>
    %1 = vector.shape_cast %0 : vector<1x4x128xf32> to vector<4x128xf32>
    %cst = arith.constant dense<0.000000e+00> : vector<4xf32>
    %2 = vector.multi_reduction <add>, %1, %cst [1] : vector<4x128xf32> to vector<4xf32>
    %3 = vector.shape_cast %2 : vector<4xf32> to vector<4x1xf32>
    %cst_2 = arith.constant 7.812500e-03 : f32
    %4 = vector.broadcast %cst_2 : f32 to vector<4x1xf32>
    %5 = arith.mulf %3, %4 : vector<4x1xf32>
    %c0_3 = arith.constant 0 : index
    %c0_4 = arith.constant 0 : index
    %6 = vector.load %arg2[%c0_3, %c0_4] : memref<4x2xf32, #tpu.memory_space<vmem>>, vector<4x2xf32>
    %7 = vector.broadcast %5 : vector<4x1xf32> to vector<4x2xf32>
    %8 = arith.mulf %6, %7 : vector<4x2xf32>
    %cst_5 = arith.constant dense<0.000000e+00> : vector<2xf32>
    %9 = vector.multi_reduction <add>, %8, %cst_5 [0] : vector<4x2xf32> to vector<2xf32>
    %10 = vector.shape_cast %9 : vector<2xf32> to vector<1x2xf32>
    %c0_6 = arith.constant 0 : index
    %c0_7 = arith.constant 0 : index
    %11 = vector.load %arg3[%c0_6, %c0_7] : memref<1x2xf32, #tpu.memory_space<vmem>>, vector<1x2xf32>
    %12 = arith.addf %10, %11 : vector<1x2xf32>
    %cst_8 = arith.constant 0.000000e+00 : f32
    %13 = vector.broadcast %cst_8 : f32 to vector<1x2xf32>
    %14 = arith.maximumf %12, %13 : vector<1x2xf32>
    %c0_9 = arith.constant 0 : index
    %c0_10 = arith.constant 0 : index
    %15 = vector.load %arg4[%c0_9, %c0_10] : memref<4x2xf32, #tpu.memory_space<vmem>>, vector<4x2xf32>
    %16 = vector.broadcast %14 : vector<1x2xf32> to vector<4x2xf32>
    %17 = arith.mulf %15, %16 : vector<4x2xf32>
    %cst_11 = arith.constant dense<0.000000e+00> : vector<4xf32>
    %18 = vector.multi_reduction <add>, %17, %cst_11 [1] : vector<4x2xf32> to vector<4xf32>
    %19 = vector.shape_cast %18 : vector<4xf32> to vector<4x1xf32>
    %c0_12 = arith.constant 0 : index
    %c0_13 = arith.constant 0 : index
    %20 = vector.load %arg5[%c0_12, %c0_13] : memref<4x1xf32, #tpu.memory_space<vmem>>, vector<4x1xf32>
    %21 = arith.addf %19, %20 : vector<4x1xf32>
    %22 = arith.negf %21 : vector<4x1xf32>
    %23 = math.exp %22 : vector<4x1xf32>
    %cst_14 = arith.constant 1.000000e+00 : f32
    %24 = vector.broadcast %cst_14 : f32 to vector<4x1xf32>
    %25 = arith.addf %24, %23 : vector<4x1xf32>
    %26 = arith.divf %24, %25 : vector<4x1xf32>
    %c0_15 = arith.constant 0 : index
    %c0_16 = arith.constant 0 : index
    %27 = vector.load %arg6[%c0_15, %c0_16] : memref<4x1xf32, #tpu.memory_space<vmem>>, vector<4x1xf32>
    %28 = vector.broadcast %27 : vector<4x1xf32> to vector<4x128xf32>
    %29 = arith.mulf %1, %28 : vector<4x128xf32>
    %cst_17 = arith.constant dense<0.000000e+00> : vector<128xf32>
    %30 = vector.multi_reduction <add>, %29, %cst_17 [0] : vector<4x128xf32> to vector<128xf32>
    %31 = vector.shape_cast %30 : vector<128xf32> to vector<1x128xf32>
    %c0_18 = arith.constant 0 : index
    %32 = memref.load %arg7[%c0_18] : memref<1xf32, #tpu.memory_space<smem>>
    %33 = vector.broadcast %32 : f32 to vector<1x128xf32>
    %34 = arith.addf %31, %33 : vector<1x128xf32>
    %35 = arith.negf %34 : vector<1x128xf32>
    %36 = math.exp %35 : vector<1x128xf32>
    %cst_19 = arith.constant 1.000000e+00 : f32
    %37 = vector.broadcast %cst_19 : f32 to vector<1x128xf32>
    %38 = arith.addf %37, %36 : vector<1x128xf32>
    %39 = arith.divf %37, %38 : vector<1x128xf32>
    %40 = vector.broadcast %26 : vector<4x1xf32> to vector<4x128xf32>
    %41 = arith.mulf %1, %40 : vector<4x128xf32>
    %42 = vector.broadcast %39 : vector<1x128xf32> to vector<4x128xf32>
    %43 = arith.mulf %1, %42 : vector<4x128xf32>
    %44 = arith.maximumf %41, %43 : vector<4x128xf32>
    %c0_20 = arith.constant 0 : index
    %c0_21 = arith.constant 0 : index
    %c0_22 = arith.constant 0 : index
    %45 = vector.load %arg8[%c0_20, %c0_21, %c0_22] : memref<1x4x128xf32, #tpu.memory_space<vmem>>, vector<1x4x128xf32>
    %46 = vector.shape_cast %45 : vector<1x4x128xf32> to vector<4x128xf32>
    %47 = vector.shape_cast %44 : vector<4x128xf32> to vector<1x4x128xf32>
    tpu.vector_store %arg8[%c0_20, %c0_21, %c0_22], %47 {strides = array<i32>} : memref<1x4x128xf32, #tpu.memory_space<vmem>>, vector<1x4x128xf32>,
    return
  }
  func.func @transform_0(%arg0: i32) -> (i32, i32, i32) {
    %c0_i32 = arith.constant 0 : i32
    %c0_i32_0 = arith.constant 0 : i32
    %c0_i32_1 = arith.constant 0 : i32
    return %arg0, %c0_i32, %c0_i32_0 : i32, i32, i32
  }
  func.func @transform_1(%arg0: i32) -> (i32, i32) {
    %c0_i32 = arith.constant 0 : i32
    %c0_i32_0 = arith.constant 0 : i32
    %c0_i32_1 = arith.constant 0 : i32
    return %c0_i32, %c0_i32_0 : i32, i32
  }
  func.func @transform_2(%arg0: i32) -> (i32, i32) {
    %c0_i32 = arith.constant 0 : i32
    %c0_i32_0 = arith.constant 0 : i32
    %c0_i32_1 = arith.constant 0 : i32
    return %c0_i32, %c0_i32_0 : i32, i32
  }
  func.func @transform_3(%arg0: i32) -> (i32, i32) {
    %c0_i32 = arith.constant 0 : i32
    %c0_i32_0 = arith.constant 0 : i32
    %c0_i32_1 = arith.constant 0 : i32
    return %c0_i32, %c0_i32_0 : i32, i32
  }
  func.func @transform_4(%arg0: i32) -> (i32, i32) {
    %c0_i32 = arith.constant 0 : i32
    %c0_i32_0 = arith.constant 0 : i32
    %c0_i32_1 = arith.constant 0 : i32
    return %c0_i32, %c0_i32_0 : i32, i32
  }
  func.func @transform_5(%arg0: i32) -> (i32, i32) {
    %c0_i32 = arith.constant 0 : i32
    %c0_i32_0 = arith.constant 0 : i32
    %c0_i32_1 = arith.constant 0 : i32
    return %c0_i32, %c0_i32_0 : i32, i32
  }
  func.func @transform_6(%arg0: i32) -> i32 {
    %c0_i32 = arith.constant 0 : i32
    %c0_i32_0 = arith.constant 0 : i32
    return %c0_i32 : i32
  }
  func.func @transform_7(%arg0: i32) -> (i32, i32, i32) {
    %c0_i32 = arith.constant 0 : i32
    %c0_i32_0 = arith.constant 0 : i32
    %c0_i32_1 = arith.constant 0 : i32
    return %arg0, %c0_i32, %c0_i32_0 : i32, i32, i32
  }
}

</mosaic_0001>

<bundles_post_ra>
// kernel: tpu_custom_call.1
= control target key start
LH: loop header
LB: loop body
LE: loop exit
PB: predicated region body
PF: predicated region fallthrough
CT: control target
= control target key end

     0   :  { %s697_s0 = inlined_call_operand.vmem [shape: f32[2,4,128], index: 0, kind: input, shape index: {}]   ;;  %s698_s1 = inlined_call_operand.vmem [shape: f32[4,2], index: 1, kind: input, shape index: {}]   ;;  %s699_s2 = inlined_call_operand.vmem [shape: f32[1,2], index: 2, kind: input, shape index: {}]   ;;  %s700_s3 = inlined_call_operand.vmem [shape: f32[4,2], index: 3, kind: input, shape index: {}]   ;;  %s701_s4 = inlined_call_operand.vmem [shape: f32[4,1], index: 4, kind: input, shape index: {}]   ;;  %s702_s5 = inlined_call_operand.vmem [shape: f32[4,1], index: 5, kind: input, shape index: {}]   ;;  %s703_s6 = inlined_call_operand.<no memory space> [shape: f32[1], index: 6, kind: input, shape index: {}]   ;;  %s704_s7 = inlined_call_operand.hbm [shape: f32[2,4,128], index: 7, kind: output, shape index: {}]  }
   0x1   :  { %12 = sst [smem:[#allocation2]] %s703_s6 }
   0x2   :  { %13 = vsyncpa [#allocation4], 0 }
   0x3   :  { %15 = vsyncpa [#allocation4 + $0x1], 0  ;;  %s585_s26 = smov 0   ;;  %s587_s27 = smov 0  }
   0x4   :  { %s589_s28 = smov 0   ;;  %s591_s29 = smov 0  }
   0x5 LB: > { %s606_s6 = sadd.s32 4294967295, %s538_s29   ;;  %s416_s30 = sadd.s32 4294967294, %s538_s29   ;;  %s538_s29 = sphi %s591_s29, %s710_s29   ;;  %s534_s28 = sphi %s589_s28, %s709_s28   ;;  %s530_s27 = sphi %s587_s27, %s708_s27   ;;  %s526_s26 = sphi %s585_s26, %s707_s26  }
   0x6   : > { %s610_s8 = sadd.s32 1, %s538_s29   ;;  %s180_s9 = sadd.s32 1, %s534_s28 }
   0x7   : > { %s177_s10 = ssub.s32 %s538_s29, %s610_s8  ;;  %p190_p0 = scmp.ne.s32.totalorder %s534_s28, %s530_s27 }
   0x8   : > { %p178_p1 = scmp.eq.s32.totalorder %s177_s10, 0  ;;  %p191_p2 = scmp.eq.s32.totalorder %s606_s6, 1 }
   0x9   : > { %p196_p3 = scmp.ne.s32.totalorder %s530_s27, %s526_s26  ;;  %p197_p4 = scmp.eq.s32.totalorder %s416_s30, 1 }
   0xa   : > { %s621_s11 = scalar_select %p178_p1, %s534_s28, %s180_s9  }
   0xb   : > { %p623_p5 = por %p191_p2, %p190_p0  ;;  %p627_p6 = por %p197_p4, %p196_p3 }
   0xc   : > { %p419_p7 = scmp.ge.s32.totalorder %s538_s29, 1  ;;  %p240_p8 = scmp.lt.s32.totalorder %s538_s29, 3 }
   0xe   : > { %p241_p9 = pnand %p419_p7, %p240_p8 }
   0xf   : > { %p271_p10 = scmp.lt.s32.totalorder (!%p241_p9), %s606_s6, 1  ;;  %s425_s17 = sshll.u32 (!%p241_p9), %s606_s6, 6 }
  0x10   : > { %244 = sbr.rel (%p241_p9) target bundleno = 504 (0x1f8), region = 48  ;;  %s355_s22 = scalar_lea.hbm (!%p241_p9), %s704_s7, %s425_s17 }
  0x15   : > { %s272_s14 = scalar_select %p271_p10, %s606_s6, 1  ;;  %vm276_vm0 = vcmask 1043456   ;;  %v311_v2 = vld [vmem:[%s702_s5] sm:$0xf]  ;;  %v540_v3 = vmov 0   ;;  %vm283_vm1 = vcmask 11264   ;;  %v295_v12 = vlaneseq }
  0x16   : > { %468 = vset.pattern.permute.xlu1 %v540_v3  ;;  %469 = vset.pattern.permute.xlu0 %v540_v3  ;;  %v281_v4 = vld [vmem:[%s698_s1] sm:$0xf]  ;;  %s541_s6 = smov [#allocation3]  }
  0x17   : > { %s421_s15 = sshll.u32 %s272_s14, 2  ;;  %314 = vperm.xlu1 %468, %v311_v2   ;;  %v296_v15 = vshrl.u32 %v295_v12, 7  ;;  %v291_v16 = vld [vmem:[%s699_s2] sm:$0x1]  ;;  %s325_s14 = sld [smem:[#allocation2]] }
  0x18   : > { %s274_s18 = scalar_lea.vmem %s697_s0, %s421_s15  ;;  %v294_v21 = vld [vmem:[%s700_s3] sm:$0xf]  ;;  %s268_s15 = sand.u32 1, %s530_s27  }
  0x19   : > { %v638_v0 = vld [vmem:[%s274_s18] sm:$0xf]  ;;  %v297_v19 = vsub.s32 0, %v296_v15  ;;  %s420_s16 = sshll.u32 %s268_s15, 2  ;;  %s344_s23 = scalar_lea.sflag [#allocation4], %s268_s15 }
  0x1a   : > { %v277_v1 = vsel %vm276_vm0, %v638_v0, 0.0  ;;  %v303_v25 = vld [vmem:[%s701_s4] sm:$0xf]  ;;  %s270_s18 = scalar_lea.vmem [#allocation3], %s420_s16  ;;  %s482_s25 = sshll.u32 %s541_s6, 4  ;;  %s483_s25 = int_to_ptr.vmem [resolvable:$false] %s482_s25 }
  0x1b   : > { %278 = vadd.xlane.f32.xlu0 %v277_v1  ;;  %s357_s19 = sshll.u32 %s270_s18, 4  ;;  %s484_s30 = scalar_lea.vmem %s483_s25, 128  ;;  %s358_s19 = int_to_ptr.vmem [resolvable:$true] %s357_s19 }
  0x1c   : > { %s478_s24 = scalar_lea.vmem %s358_s19, 64  ;;  %p485_p0 = scmp.lt.s32.totalorder %s358_s19, %s483_s25 }
  0x1d   : > { %v326_v41 = vstv %s325_s14  ;;  %p479_p11 = scmp.ne.s32.totalorder %s358_s19, %s478_s24  ;;  %p486_p1 = scmp.lt.s32.totalorder %s484_s30, %s478_s24 }
  0x1f   : > { %p480_p12 = pnand %p479_p11, %p623_p5  ;;  %p487_p2 = por %p486_p1, %p485_p0 }
  0x21   : > { %p481_p13 = pneg %p480_p12 }
  0x23   : > { %p488_p3 = pnand %p487_p2, %p481_p13 }
  0x92   : > { %v315_v32 = vpop.permute.xlu1 %314 }
  0x93   : > { %v317_v33 = vmul.f32 %v315_v32, %v638_v0 }
  0x95   : > { %v318_v34 = vsel %vm276_vm0, %v317_v33, 0.0 }
  0x96   : > { %v319_v35 = vrot.slane %v318_v34, 4 }
  0x98   : > { %v320_v36 = vadd.f32 %v319_v35, %v318_v34 }
  0x9a   : > { %v321_v37 = vrot.slane %v320_v36, 2 }
  0x9c   : > { %v322_v38 = vadd.f32 %v321_v37, %v320_v36 }
  0x9e   : > { %v323_v39 = vrot.slane %v322_v38, 1 }
  0xa0   : > { %v324_v40 = vadd.f32 %v323_v39, %v322_v38 }
  0xa2   : > { %v327_v42 = vadd.f32 %v326_v41, %v324_v40 }
  0xa4   : > { %v279_v5 = vpop.xlane.xlu0 %278  ;;  %v423_v43 = vmul.f32 -1.442695, %v327_v42 }
  0xa5   : > { %v280_v6 = vmul.f32 0.0078125, %v279_v5 }
  0xa7   : > { %v282_v7 = vmul.f32 %v281_v4, %v280_v6 }
  0xa9   : > { %v284_v8 = vsel %vm283_vm1, %v282_v7, 0.0 }
  0xaa   : > { %v285_v9 = vrot.slane %v284_v8, 4 }
  0xac   : > { %v286_v10 = vadd.f32 %v285_v9, %v284_v8 }
  0xae   : > { %v287_v11 = vrot.slane %v286_v10, 2 }
  0xb0   : > { %v288_v13 = vadd.f32 %v287_v11, %v286_v10 }
  0xb2   : > { %v289_v14 = vrot.slane %v288_v13, 1 }
  0xb4   : > { %v290_v17 = vadd.f32 %v289_v14, %v288_v13 }
  0xb6   : > { %v292_v18 = vadd.f32 %v291_v16, %v290_v17 }
  0xb8   : > { %v293_v20 = vmax.f32 %v292_v18, 0.0 }
  0xba   : > { %v298_v22 = vrot.slane %v293_v20, %v297_v19 }
  0xbc   : > { %v299_v23 = vmul.f32 %v298_v22, %v294_v21 }
  0xbe   : > { %v300_v24 = vsel %vm283_vm1, %v299_v23, 0.0 }
  0xbf   : > { %301 = vadd.xlane.f32.xlu0 %v300_v24 }
 0x148   : > { %v302_v26 = vpop.xlane.xlu0 %301 }
 0x149   : > { %v304_v27 = vadd.f32 %v303_v25, %v302_v26 }
 0x14b   : > { %v422_v28 = vmul.f32 -1.442695, %v304_v27 }
 0x14d   : > { %470 = vpow2.f32 %v422_v28 }
 0x15a   : > { %v471_v29 = vpop.eup %470 }
 0x15b   : > { %v308_v30 = vadd.f32 1.0, %v471_v29 }
 0x15d   : > { %472 = vrcp.f32 %v308_v30 }
 0x15e   : > { %474 = vpow2.f32 %v423_v43 }
 0x16a   : > { %v473_v31 = vpop.eup %472 }
 0x16b   : > { %336 = vperm.xlu1 %468, %v473_v31   ;;  %v475_v44 = vpop.eup %474 }
 0x16c   : > { %v331_v45 = vadd.f32 1.0, %v475_v44 }
 0x16e   : > { %476 = vrcp.f32 %v331_v45 }
 0x17b   : > { %v477_v46 = vpop.eup %476 }
 0x17c   : > { %v340_v48 = vmul.f32 %v477_v46, %v638_v0 }
 0x1e6   : > { %v337_v47 = vpop.permute.xlu1 %336 }
 0x1e7   : > { %v339_v49 = vmul.f32 %v337_v47, %v638_v0 }
 0x1e9   : > { %v341_v50 = vmax.f32 %v339_v49, %v340_v48 }
 0x1eb   : > { %342 = vst [vmem:[%s270_s18] sm:$0xf] %v341_v50 }
 0x1ec   : > { %491 = shalt.err (!%p488_p3)
}
 0x1ed   : > { %s492_s9 = scalar_lea.hbm %s355_s22, 64  ;;  %s496_s15 = scalar_lea.hbm %s704_s7, 128 }
 0x1ee   : > { %p493_p4 = scmp.ne.s32.totalorder %s355_s22, %s492_s9  ;;  %p497_p9 = scmp.lt.s32.totalorder %s355_s22, %s704_s7 }
 0x1ef   : > { %p498_p10 = scmp.lt.s32.totalorder %s496_s15, %s492_s9 }
 0x1f0   : > { %p494_p7 = pnand %p493_p4, %p623_p5 }
 0x1f1   : > { %p499_p11 = por %p498_p10, %p497_p9 }
 0x1f2   : > { %p495_p8 = pneg %p494_p7 }
 0x1f4   : > { %p500_p12 = pnand %p499_p11, %p495_p8 }
 0x1f6   : > { %503 = shalt.err (!%p500_p12)
}
 0x1f7   : > { %428 = dma.vmem_to_hbm [thread:$0]  (%p623_p5), %s358_s19, 64, %s355_s22, %s344_s23  }
 0x1f8 PF: > { %p434_p13 = scmp.ge.s32.totalorder %s538_s29, 2  ;;  %s369_s18 = sand.u32 1, %s526_s26  }
 0x1f9   : > { %s370_s20 = scalar_lea.sflag [#allocation4], %s369_s18 }
 0x1fa   : > { %p431_p0 = pnand %p434_p13, %p627_p6 }
 0x1fc   : > { %p432_p1 = pneg %p431_p0 }
 0x1fe   : > { %521 = dma.done.wait (%p432_p1), %s370_s20, 64  }
 0x1ff   : > { %523 = vsyncadd (%p432_p1), %s370_s20, 4294967232  ;;  %p18_p2 = scmp.ge.s32.totalorder %s610_s8, 4   ;;  %s707_s26 = smov %s530_s27 }
 0x200   : > { %s708_s27 = smov %s534_s28  ;;  %s709_s28 = smov %s621_s11 }
 0x201   : > { %s710_s29 = smov %s610_s8  ;;  %20 = sbr.rel (!%p18_p2) target bundleno = 5 (0x5), region = 83 }
 0x206   :  { %375 = vsyncpa [#allocation4], 1 }
 0x207   :  { %377 = vsyncpa [#allocation4 + $0x1], 1 }

</bundles_post_ra>
